<compile_context>
chip_gen: v7x
topology: tpu7x:2x2x1
jax: 0.10.0
libtpu: 0.0.40
codegen_flags: <defaults>
</compile_context>

<pallas_src>
import jax
import jax.numpy as jnp
from jax.experimental import pallas as pl
from jax.experimental.pallas import tpu as pltpu
import numpy as np


def specmlp_kernel(wts_ref, x_ref, w1_ref, s1_ref, wl_ref, sl_ref, wf_ref, bf_ref,
                   logp_ref, logits_ref, mids_ref):
    """One row-tile of the SpecMLP forward.

    wts_ref: [L]          f32 SMEM   pre-normalised combination weights
    x_ref:   [TILE_N, F]  bf16       input rows
    w1_ref:  [F, H] bf16,  s1_ref: [1, H] f32      (Linear bias + BN folded)
    wl_ref:  [L-1, H, H] bf16, sl_ref: [L-1, 1, H] f32
    wf_ref:  [H, C] bf16,  bf_ref: [1, C] f32
    logp_ref:   [TILE_N, C]   f32   log_softmax output
    logits_ref: [TILE_N, C]   bf16  fc output (last middle feature)
    mids_ref:   [L, TILE_N, H] bf16 hidden middle features
    """
    L = mids_ref.shape[0]

    # --- conv1 (Linear + BN folded) -----------------------------------------
    h = jnp.dot(x_ref[...], w1_ref[...],
                preferred_element_type=jnp.float32) + s1_ref[...]
    mids_ref[0] = h.astype(mids_ref.dtype)
    acc = h * wts_ref[0]                       # on-the-fly spectral combination

    # --- hidden layers: (Linear + BN folded) -> ReLU -> dropout(p=0) ---------
    for i in range(L - 1):
        h = jnp.dot(h.astype(wl_ref.dtype), wl_ref[i],
                    preferred_element_type=jnp.float32) + sl_ref[i]
        h = jnp.maximum(h, 0.0)
        mids_ref[i + 1] = h.astype(mids_ref.dtype)
        acc = acc + h * wts_ref[i + 1]

    # --- fc + log_softmax (compact C columns -> no padded-lane masking) ------
    logits = jnp.dot(acc.astype(wf_ref.dtype), wf_ref[...],
                     preferred_element_type=jnp.float32) + bf_ref[...]
    logits_ref[...] = logits.astype(logits_ref.dtype)

    m = jnp.max(logits, axis=1, keepdims=True)
    s = logits - m
    lse = jnp.log(jnp.sum(jnp.exp(s), axis=1, keepdims=True))
    logp_ref[...] = (s - lse).astype(logp_ref.dtype)


def _round_up(x, m):
    return (x + m - 1) // m * m


def _row_tiling(n_rows, max_row_tile, lane_align=128, prefer_min_tiles=2):
    """Balanced, MXU/sublane-aligned row tiles; >=2 tiles for large N (v7x 2 TCs)."""
    if n_rows <= 2 * lane_align:
        tile = _round_up(n_rows, 16)          # bf16 sublane packing
        return tile, tile
    n_tiles = max(pl.cdiv(n_rows, max_row_tile), prefer_min_tiles)
    tile = _round_up(pl.cdiv(n_rows, n_tiles), lane_align)
    return tile, _round_up(n_rows, tile)


def _vmem_limit_bytes(tile_n, F, H, C, L, mid_bytes=2):
    """Explicit VMEM budget: resident weights (x2 worst case) + double-buffered IO."""
    bf16, f32 = 2, 4
    weights = ((F * H + (L - 1) * H * H + H * C) * bf16 + (L * H + C) * f32) * 2
    per_tile = (tile_n * F * bf16            # x
                + tile_n * C * f32           # log_softmax
                + tile_n * C * mid_bytes     # logits
                + L * tile_n * H * mid_bytes)  # mids
    est = weights + 2 * per_tile
    # 32 MiB floor (>= scoped defaults on all gens), 64 MiB cap (v7x physical).
    return int(min(64 << 20, max(32 << 20, int(est * 1.5) + (4 << 20))))


def bn_affine(gamma, beta, rmean, rvar, eps=1e-5):
    """Fold BatchNorm1d (eval) into per-feature scale/shift."""
    scale = gamma / jnp.sqrt(rvar + eps)
    shift = beta - rmean * scale
    return scale, shift


def fold_params(params, compute_dtype=jnp.bfloat16):
    """Fold Linear bias + BN into one weight/shift per layer; pre-normalise wts."""
    (w1, b1, s1, t1, wl, bl, sl, tl, wf, bf, wts) = params
    w1f = (w1 * s1).astype(compute_dtype)               # [F, H]
    sh1 = (b1 * s1 + t1).astype(jnp.float32)            # [1, H]
    wlf = (wl * sl).astype(compute_dtype)                # [L-1, H, H]
    shl = (bl * sl + tl).astype(jnp.float32)             # [L-1, 1, H]
    wfc = wf.astype(compute_dtype)                       # [H, C]
    bfc = bf.astype(jnp.float32)                         # [1, C]
    wts_n = (wts / jnp.sum(wts)).astype(jnp.float32)     # [L] pre-normalised
    return w1f, sh1, wlf, shl, wfc, bfc, wts_n


def specmlp_forward(x, params, *, compute_dtype=jnp.bfloat16, mid_dtype=jnp.bfloat16,
                    max_row_tile=512, prefer_min_row_tiles=2):
    N, F = x.shape
    w1, wl, wf = params[0], params[4], params[8]
    H = w1.shape[1]
    C = wf.shape[1]
    L = wl.shape[0] + 1

    tile_n, n_pad = _row_tiling(N, max_row_tile, prefer_min_tiles=prefer_min_row_tiles)
    n_tiles = n_pad // tile_n

    w1f, sh1, wlf, shl, wfc, bfc, wts_n = fold_params(params, compute_dtype)
    xp = x.astype(compute_dtype)
    if n_pad != N:
        xp = jnp.pad(xp, ((0, n_pad - N), (0, 0)))

    row2 = lambda bs: pl.BlockSpec(bs, lambda i: (i, 0))        # row-tiled 2-D

    def weight_spec(bs, single_buffer):
        ndim = len(bs)
        idx = lambda i: (0,) * ndim                             # grid-invariant
        if single_buffer:
            return pl.BlockSpec(bs, idx, pipeline_mode=pl.Buffered(1))
        return pl.BlockSpec(bs, idx)

    def run(single_buffer_weights):
        in_specs = [
            pl.BlockSpec(memory_space=pltpu.MemorySpace.SMEM),   # wts (L,) scalars
            row2((tile_n, F)),                                   # x rows (true F)
            weight_spec((F, H), single_buffer_weights),          # W1'  (bias+BN folded)
            weight_spec((1, H), single_buffer_weights),          # shift1'
            weight_spec((L - 1, H, H), single_buffer_weights),   # Wl'
            weight_spec((L - 1, 1, H), single_buffer_weights),   # shiftl'
            weight_spec((H, C), single_buffer_weights),          # Wf
            weight_spec((1, C), single_buffer_weights),          # bf
        ]
        return pl.pallas_call(
            specmlp_kernel,
            out_shape=(
                jax.ShapeDtypeStruct((n_pad, C), jnp.float32),   # log_softmax (f32)
                jax.ShapeDtypeStruct((n_pad, C), mid_dtype),     # fc output
                jax.ShapeDtypeStruct((L, n_pad, H), mid_dtype),  # hidden middle feats
            ),
            grid=(n_tiles,),
            in_specs=in_specs,
            out_specs=(
                row2((tile_n, C)),
                row2((tile_n, C)),
                pl.BlockSpec((L, tile_n, H), lambda i: (0, i, 0)),
            ),
            compiler_params=pltpu.CompilerParams(
                dimension_semantics=("parallel",),
                vmem_limit_bytes=_vmem_limit_bytes(tile_n, F, H, C, L)),
        )(wts_n, xp, w1f, sh1, wlf, shl, wfc, bfc)

    try:
        logp, logits, mids = run(True)
    except Exception:
        # TODO(synk): pl.Buffered(1) single-buffering of resident weights not
        # accepted by this jax/Mosaic version; fall back to default double buffering.
        logp, logits, mids = run(False)

    if n_pad != N:                        # only the row dim ever needs a slice
        logp, logits, mids = logp[:N], logits[:N], mids[:, :N]
    middle_feats = [mids[i] for i in range(L)] + [logits]
    return logp, middle_feats


def make_params(key, num_features, stu_hidden, num_classes, stu_layers):
    ks = jax.random.split(key, 20)
    f32 = jnp.float32
    u = lambda k, shape, lo=-0.1, hi=0.1: jax.random.uniform(k, shape, f32, lo, hi)

    # conv1 + BN1
    w1 = u(ks[0], (num_features, stu_hidden))
    b1 = u(ks[1], (1, stu_hidden))
    s1, t1 = bn_affine(u(ks[2], (stu_hidden,), 0.5, 1.5),
                       u(ks[3], (stu_hidden,)),
                       u(ks[4], (stu_hidden,)),
                       u(ks[5], (stu_hidden,), 0.5, 1.5))
    s1, t1 = s1[None, :], t1[None, :]

    # hidden layers + BNs (stacked along leading axis)
    nhl = stu_layers - 1
    wl = u(ks[6], (nhl, stu_hidden, stu_hidden))
    bl = u(ks[7], (nhl, 1, stu_hidden))
    sl, tl = bn_affine(u(ks[8], (nhl, stu_hidden), 0.5, 1.5),
                       u(ks[9], (nhl, stu_hidden)),
                       u(ks[10], (nhl, stu_hidden)),
                       u(ks[11], (nhl, stu_hidden), 0.5, 1.5))
    sl = sl.reshape(nhl, 1, stu_hidden)
    tl = tl.reshape(nhl, 1, stu_hidden)

    # fc + layer-combination weights (nn.init.uniform_(weights, 0, 1))
    wf = u(ks[12], (stu_hidden, num_classes))
    bf = u(ks[13], (1, num_classes))
    wts = jax.random.uniform(ks[14], (stu_layers,), f32, 0.0, 1.0)

    return (w1, b1, s1, t1, wl, bl, sl, tl, wf, bf, wts)


def specmlp_reference(x, params):
    """Pure-JAX f32 reference mirroring the PyTorch forward (eval BN, p=0 dropout)."""
    (w1, b1, s1, t1, wl, bl, sl, tl, wf, bf, wts) = params
    L = wl.shape[0] + 1
    h = x @ w1 + b1
    h = h * s1 + t1
    mids = [h]
    for i in range(L - 1):
        h = h @ wl[i] + bl[i]
        h = h * sl[i] + tl[i]
        h = jnp.maximum(h, 0.0)
        mids.append(h)
    h = h * wts[-1]
    for i in range(L - 1):
        h = h + mids[i] * wts[i]
    h = h / wts.sum()
    logits = h @ wf + bf
    return jax.nn.log_softmax(logits, axis=1), mids + [logits]


def specmlp_reference_folded(x, params, compute_dtype=jnp.bfloat16):
    """Mirror of the kernel math (folded params, bf16 matmuls, f32 accumulate)."""
    (w1, b1, s1, t1, wl, bl, sl, tl, wf, bf, wts) = params
    L = wl.shape[0] + 1
    cd = compute_dtype
    w1f = (w1 * s1).astype(cd)
    sh1 = b1 * s1 + t1
    wlf = (wl * sl).astype(cd)
    shl = bl * sl + tl
    wts_n = wts / jnp.sum(wts)

    h = jnp.dot(x.astype(cd), w1f, preferred_element_type=jnp.float32) + sh1
    mids = [h]
    acc = h * wts_n[0]
    for i in range(L - 1):
        h = jnp.dot(h.astype(cd), wlf[i], preferred_element_type=jnp.float32) + shl[i]
        h = jnp.maximum(h, 0.0)
        mids.append(h)
        acc = acc + h * wts_n[i + 1]
    logits = jnp.dot(acc.astype(cd), wf.astype(cd),
                     preferred_element_type=jnp.float32) + bf
    return jax.nn.log_softmax(logits, axis=1), mids + [logits]


if __name__ == "__main__":
    # args: num_features=16, stu_hidden=32, num_classes=8, stu_layers=3,
    #       dropout=0.0, distill_type='SpecMLP'
    N, F, H, C, L = 32, 16, 32, 8, 3

    key = jax.random.PRNGKey(0)
    kx, kp = jax.random.split(key)
    x = jax.random.normal(kx, (N, F), jnp.float32)
    params = make_params(kp, F, H, C, L)

    logp, middle_feats = specmlp_forward(x, params)
    logp = jax.block_until_ready(logp)
    middle_feats = [jax.block_until_ready(m) for m in middle_feats]

    f32 = lambda a: np.asarray(jnp.asarray(a, jnp.float32))

    # Check against a reference mirroring the kernel's folded bf16 math
    # (kernel mids/logits are bf16-stored -> modest tolerance).
    logp_f, mids_f = specmlp_reference_folded(x, params)
    np.testing.assert_allclose(f32(logp), f32(logp_f), atol=2e-2, rtol=2e-2)
    for a, b in zip(middle_feats, mids_f):
        np.testing.assert_allclose(f32(a), f32(b), atol=2e-2, rtol=2e-2)

    # Loose check against the unfolded full-f32 PyTorch-faithful reference.
    logp_r, mids_r = specmlp_reference(x, params)
    np.testing.assert_allclose(f32(logp), f32(logp_r), atol=3e-2, rtol=3e-2)
    for a, b in zip(middle_feats, mids_r):
        np.testing.assert_allclose(f32(a), f32(b), atol=3e-2, rtol=3e-2)

    print("KERNEL_OK")
</pallas_src>

<mosaic_0001>
module attributes {stable_mosaic.version = 11 : i64} {
  func.func @specmlp_kernel(%arg0: i32, %arg1: memref<3xf32, #tpu.memory_space<smem>>, %arg2: memref<32x16xbf16, #tpu.memory_space<vmem>>, %arg3: memref<16x32xbf16, #tpu.memory_space<vmem>>, %arg4: memref<1x32xf32, #tpu.memory_space<vmem>>, %arg5: memref<2x32x32xbf16, #tpu.memory_space<vmem>>, %arg6: memref<2x1x32xf32, #tpu.memory_space<vmem>>, %arg7: memref<32x8xbf16, #tpu.memory_space<vmem>>, %arg8: memref<1x8xf32, #tpu.memory_space<vmem>>, %arg9: memref<32x8xf32, #tpu.memory_space<vmem>>, %arg10: memref<32x8xbf16, #tpu.memory_space<vmem>>, %arg11: memref<3x32x32xbf16, #tpu.memory_space<vmem>>) attributes {dimension_semantics = [#tpu.dimension_semantics<parallel>], iteration_bounds = array<i64: 1>, scalar_prefetch = 0 : i64, scratch_operands = 0 : i64, tpu.core_type = #tpu.core_type<tc>, window_params = [{transform_indices = @transform_0, window_bounds = array<i64: 3>}, {transform_indices = @transform_1, window_bounds = array<i64: 32, 16>}, {pipeline_mode = #tpu.pipeline_mode<synchronous>, transform_indices = @transform_2, window_bounds = array<i64: 16, 32>}, {pipeline_mode = #tpu.pipeline_mode<synchronous>, transform_indices = @transform_3, window_bounds = array<i64: 1, 32>}, {pipeline_mode = #tpu.pipeline_mode<synchronous>, transform_indices = @transform_4, window_bounds = array<i64: 2, 32, 32>}, {pipeline_mode = #tpu.pipeline_mode<synchronous>, transform_indices = @transform_5, window_bounds = array<i64: 2, 1, 32>}, {pipeline_mode = #tpu.pipeline_mode<synchronous>, transform_indices = @transform_6, window_bounds = array<i64: 32, 8>}, {pipeline_mode = #tpu.pipeline_mode<synchronous>, transform_indices = @transform_7, window_bounds = array<i64: 1, 8>}, {transform_indices = @transform_8, window_bounds = array<i64: 32, 8>}, {transform_indices = @transform_9, window_bounds = array<i64: 32, 8>}, {transform_indices = @transform_10, window_bounds = array<i64: 3, 32, 32>}]} {
    %c0 = arith.constant 0 : index
    %c0_0 = arith.constant 0 : index
    %0 = vector.load %arg2[%c0, %c0_0] : memref<32x16xbf16, #tpu.memory_space<vmem>>, vector<32x16xbf16>
    %c0_1 = arith.constant 0 : index
    %c0_2 = arith.constant 0 : index
    %1 = vector.load %arg3[%c0_1, %c0_2] : memref<16x32xbf16, #tpu.memory_space<vmem>>, vector<16x32xbf16>
    %cst = arith.constant dense<0.000000e+00> : vector<32x32xf32>
    %2 = tpu.matmul %0, %1, %cst {dimension_numbers = #tpu.dot_dimension_numbers<[1], [0], [0], [1], [0, 0, 1, 1], [], []>} : vector<32x16xbf16>, vector<16x32xbf16>, vector<32x32xf32> -> vector<32x32xf32>
    %c0_3 = arith.constant 0 : index
    %c0_4 = arith.constant 0 : index
    %3 = vector.load %arg4[%c0_3, %c0_4] : memref<1x32xf32, #tpu.memory_space<vmem>>, vector<1x32xf32>
    %4 = vector.broadcast %3 : vector<1x32xf32> to vector<32x32xf32>
    %5 = arith.addf %2, %4 : vector<32x32xf32>
    %6 = arith.truncf %5 : vector<32x32xf32> to vector<32x32xbf16>
    %c0_5 = arith.constant 0 : index
    %c0_6 = arith.constant 0 : index
    %c0_7 = arith.constant 0 : index
    %7 = vector.load %arg11[%c0_5, %c0_6, %c0_7] : memref<3x32x32xbf16, #tpu.memory_space<vmem>>, vector<1x32x32xbf16>
    %8 = vector.shape_cast %7 : vector<1x32x32xbf16> to vector<32x32xbf16>
    %9 = vector.shape_cast %6 : vector<32x32xbf16> to vector<1x32x32xbf16>
    tpu.vector_store %arg11[%c0_5, %c0_6, %c0_7], %9 {strides = array<i32>} : memref<3x32x32xbf16, #tpu.memory_space<vmem>>, vector<1x32x32xbf16>,
    %c0_8 = arith.constant 0 : index
    %10 = memref.load %arg1[%c0_8] : memref<3xf32, #tpu.memory_space<smem>>
    %11 = vector.broadcast %10 : f32 to vector<32x32xf32>
    %12 = arith.mulf %5, %11 : vector<32x32xf32>
    %13 = arith.truncf %5 : vector<32x32xf32> to vector<32x32xbf16>
    %c0_9 = arith.constant 0 : index
    %c0_10 = arith.constant 0 : index
    %c0_11 = arith.constant 0 : index
    %14 = vector.load %arg5[%c0_9, %c0_10, %c0_11] : memref<2x32x32xbf16, #tpu.memory_space<vmem>>, vector<1x32x32xbf16>
    %15 = vector.shape_cast %14 : vector<1x32x32xbf16> to vector<32x32xbf16>
    %cst_12 = arith.constant dense<0.000000e+00> : vector<32x32xf32>
    %16 = tpu.matmul %13, %15, %cst_12 {dimension_numbers = #tpu.dot_dimension_numbers<[1], [0], [0], [1], [0, 0, 1, 1], [], []>} : vector<32x32xbf16>, vector<32x32xbf16>, vector<32x32xf32> -> vector<32x32xf32>
    %c0_13 = arith.constant 0 : index
    %c0_14 = arith.constant 0 : index
    %c0_15 = arith.constant 0 : index
    %17 = vector.load %arg6[%c0_13, %c0_14, %c0_15] : memref<2x1x32xf32, #tpu.memory_space<vmem>>, vector<1x1x32xf32>
    %18 = vector.shape_cast %17 : vector<1x1x32xf32> to vector<1x32xf32>
    %19 = vector.broadcast %18 : vector<1x32xf32> to vector<32x32xf32>
    %20 = arith.addf %16, %19 : vector<32x32xf32>
    %cst_16 = arith.constant 0.000000e+00 : f32
    %21 = vector.broadcast %cst_16 : f32 to vector<32x32xf32>
    %22 = arith.maximumf %20, %21 : vector<32x32xf32>
    %23 = arith.truncf %22 : vector<32x32xf32> to vector<32x32xbf16>
    %c1 = arith.constant 1 : index
    %c0_17 = arith.constant 0 : index
    %c0_18 = arith.constant 0 : index
    %24 = vector.load %arg11[%c1, %c0_17, %c0_18] : memref<3x32x32xbf16, #tpu.memory_space<vmem>>, vector<1x32x32xbf16>
    %25 = vector.shape_cast %24 : vector<1x32x32xbf16> to vector<32x32xbf16>
    %26 = vector.shape_cast %23 : vector<32x32xbf16> to vector<1x32x32xbf16>
    tpu.vector_store %arg11[%c1, %c0_17, %c0_18], %26 {strides = array<i32>} : memref<3x32x32xbf16, #tpu.memory_space<vmem>>, vector<1x32x32xbf16>,
    %c1_19 = arith.constant 1 : index
    %27 = memref.load %arg1[%c1_19] : memref<3xf32, #tpu.memory_space<smem>>
    %28 = vector.broadcast %27 : f32 to vector<32x32xf32>
    %29 = arith.mulf %22, %28 : vector<32x32xf32>
    %30 = arith.addf %12, %29 : vector<32x32xf32>
    %31 = arith.truncf %22 : vector<32x32xf32> to vector<32x32xbf16>
    %c1_20 = arith.constant 1 : index
    %c0_21 = arith.constant 0 : index
    %c0_22 = arith.constant 0 : index
    %32 = vector.load %arg5[%c1_20, %c0_21, %c0_22] : memref<2x32x32xbf16, #tpu.memory_space<vmem>>, vector<1x32x32xbf16>
    %33 = vector.shape_cast %32 : vector<1x32x32xbf16> to vector<32x32xbf16>
    %cst_23 = arith.constant dense<0.000000e+00> : vector<32x32xf32>
    %34 = tpu.matmul %31, %33, %cst_23 {dimension_numbers = #tpu.dot_dimension_numbers<[1], [0], [0], [1], [0, 0, 1, 1], [], []>} : vector<32x32xbf16>, vector<32x32xbf16>, vector<32x32xf32> -> vector<32x32xf32>
    %c1_24 = arith.constant 1 : index
    %c0_25 = arith.constant 0 : index
    %c0_26 = arith.constant 0 : index
    %35 = vector.load %arg6[%c1_24, %c0_25, %c0_26] : memref<2x1x32xf32, #tpu.memory_space<vmem>>, vector<1x1x32xf32>
    %36 = vector.shape_cast %35 : vector<1x1x32xf32> to vector<1x32xf32>
    %37 = vector.broadcast %36 : vector<1x32xf32> to vector<32x32xf32>
    %38 = arith.addf %34, %37 : vector<32x32xf32>
    %cst_27 = arith.constant 0.000000e+00 : f32
    %39 = vector.broadcast %cst_27 : f32 to vector<32x32xf32>
    %40 = arith.maximumf %38, %39 : vector<32x32xf32>
    %41 = arith.truncf %40 : vector<32x32xf32> to vector<32x32xbf16>
    %c2 = arith.constant 2 : index
    %c0_28 = arith.constant 0 : index
    %c0_29 = arith.constant 0 : index
    %42 = vector.load %arg11[%c2, %c0_28, %c0_29] : memref<3x32x32xbf16, #tpu.memory_space<vmem>>, vector<1x32x32xbf16>
    %43 = vector.shape_cast %42 : vector<1x32x32xbf16> to vector<32x32xbf16>
    %44 = vector.shape_cast %41 : vector<32x32xbf16> to vector<1x32x32xbf16>
    tpu.vector_store %arg11[%c2, %c0_28, %c0_29], %44 {strides = array<i32>} : memref<3x32x32xbf16, #tpu.memory_space<vmem>>, vector<1x32x32xbf16>,
    %c2_30 = arith.constant 2 : index
    %45 = memref.load %arg1[%c2_30] : memref<3xf32, #tpu.memory_space<smem>>
    %46 = vector.broadcast %45 : f32 to vector<32x32xf32>
    %47 = arith.mulf %40, %46 : vector<32x32xf32>
    %48 = arith.addf %30, %47 : vector<32x32xf32>
    %49 = arith.truncf %48 : vector<32x32xf32> to vector<32x32xbf16>
    %c0_31 = arith.constant 0 : index
    %c0_32 = arith.constant 0 : index
    %50 = vector.load %arg7[%c0_31, %c0_32] : memref<32x8xbf16, #tpu.memory_space<vmem>>, vector<32x8xbf16>
    %cst_33 = arith.constant dense<0.000000e+00> : vector<32x8xf32>
    %51 = tpu.matmul %49, %50, %cst_33 {dimension_numbers = #tpu.dot_dimension_numbers<[1], [0], [0], [1], [0, 0, 1, 1], [], []>} : vector<32x32xbf16>, vector<32x8xbf16>, vector<32x8xf32> -> vector<32x8xf32>
    %c0_34 = arith.constant 0 : index
    %c0_35 = arith.constant 0 : index
    %52 = vector.load %arg8[%c0_34, %c0_35] : memref<1x8xf32, #tpu.memory_space<vmem>>, vector<1x8xf32>
    %53 = vector.broadcast %52 : vector<1x8xf32> to vector<32x8xf32>
    %54 = arith.addf %51, %53 : vector<32x8xf32>
    %55 = arith.truncf %54 : vector<32x8xf32> to vector<32x8xbf16>
    %c0_36 = arith.constant 0 : index
    %c0_37 = arith.constant 0 : index
    %56 = vector.load %arg10[%c0_36, %c0_37] : memref<32x8xbf16, #tpu.memory_space<vmem>>, vector<32x8xbf16>
    tpu.vector_store %arg10[%c0_36, %c0_37], %55 {strides = array<i32>} : memref<32x8xbf16, #tpu.memory_space<vmem>>, vector<32x8xbf16>,
    %cst_38 = arith.constant dense<0xFF800000> : vector<32xf32>
    %57 = vector.multi_reduction <maximumf>, %54, %cst_38 [1] : vector<32x8xf32> to vector<32xf32>
    %58 = vector.shape_cast %57 : vector<32xf32> to vector<32x1xf32>
    %59 = vector.broadcast %58 : vector<32x1xf32> to vector<32x8xf32>
    %60 = arith.subf %54, %59 : vector<32x8xf32>
    %61 = math.exp %60 : vector<32x8xf32>
    %cst_39 = arith.constant dense<0.000000e+00> : vector<32xf32>
    %62 = vector.multi_reduction <add>, %61, %cst_39 [1] : vector<32x8xf32> to vector<32xf32>
    %63 = vector.shape_cast %62 : vector<32xf32> to vector<32x1xf32>
    %64 = math.log %63 : vector<32x1xf32>
    %65 = vector.broadcast %64 : vector<32x1xf32> to vector<32x8xf32>
    %66 = arith.subf %60, %65 : vector<32x8xf32>
    %c0_40 = arith.constant 0 : index
    %c0_41 = arith.constant 0 : index
    %67 = vector.load %arg9[%c0_40, %c0_41] : memref<32x8xf32, #tpu.memory_space<vmem>>, vector<32x8xf32>
    tpu.vector_store %arg9[%c0_40, %c0_41], %66 {strides = array<i32>} : memref<32x8xf32, #tpu.memory_space<vmem>>, vector<32x8xf32>,
    return
  }
  func.func @transform_0(%arg0: i32) -> i32 {
    %c0_i32 = arith.constant 0 : i32
    %c0_i32_0 = arith.constant 0 : i32
    return %c0_i32 : i32
  }
  func.func @transform_1(%arg0: i32) -> (i32, i32) {
    %c0_i32 = arith.constant 0 : i32
    %c0_i32_0 = arith.constant 0 : i32
    return %arg0, %c0_i32 : i32, i32
  }
  func.func @transform_2(%arg0: i32) -> (i32, i32) {
    %c0_i32 = arith.constant 0 : i32
    %c0_i32_0 = arith.constant 0 : i32
    %c0_i32_1 = arith.constant 0 : i32
    return %c0_i32, %c0_i32_0 : i32, i32
  }
  func.func @transform_3(%arg0: i32) -> (i32, i32) {
    %c0_i32 = arith.constant 0 : i32
    %c0_i32_0 = arith.constant 0 : i32
    %c0_i32_1 = arith.constant 0 : i32
    return %c0_i32, %c0_i32_0 : i32, i32
  }
  func.func @transform_4(%arg0: i32) -> (i32, i32, i32) {
    %c0_i32 = arith.constant 0 : i32
    %c0_i32_0 = arith.constant 0 : i32
    %c0_i32_1 = arith.constant 0 : i32
    %c0_i32_2 = arith.constant 0 : i32
    return %c0_i32, %c0_i32_0, %c0_i32_1 : i32, i32, i32
  }
  func.func @transform_5(%arg0: i32) -> (i32, i32, i32) {
    %c0_i32 = arith.constant 0 : i32
    %c0_i32_0 = arith.constant 0 : i32
    %c0_i32_1 = arith.constant 0 : i32
    %c0_i32_2 = arith.constant 0 : i32
    return %c0_i32, %c0_i32_0, %c0_i32_1 : i32, i32, i32
  }
  func.func @transform_6(%arg0: i32) -> (i32, i32) {
    %c0_i32 = arith.constant 0 : i32
    %c0_i32_0 = arith.constant 0 : i32
    %c0_i32_1 = arith.constant 0 : i32
    return %c0_i32, %c0_i32_0 : i32, i32
  }
  func.func @transform_7(%arg0: i32) -> (i32, i32) {
    %c0_i32 = arith.constant 0 : i32
    %c0_i32_0 = arith.constant 0 : i32
    %c0_i32_1 = arith.constant 0 : i32
    return %c0_i32, %c0_i32_0 : i32, i32
  }
  func.func @transform_8(%arg0: i32) -> (i32, i32) {
    %c0_i32 = arith.constant 0 : i32
    %c0_i32_0 = arith.constant 0 : i32
    return %arg0, %c0_i32 : i32, i32
  }
  func.func @transform_9(%arg0: i32) -> (i32, i32) {
    %c0_i32 = arith.constant 0 : i32
    %c0_i32_0 = arith.constant 0 : i32
    return %arg0, %c0_i32 : i32, i32
  }
  func.func @transform_10(%arg0: i32) -> (i32, i32, i32) {
    %c0_i32 = arith.constant 0 : i32
    %c0_i32_0 = arith.constant 0 : i32
    %c0_i32_1 = arith.constant 0 : i32
    return %c0_i32, %arg0, %c0_i32_0 : i32, i32, i32
  }
}

module attributes {stable_mosaic.version = 11 : i64} {
  func.func @specmlp_kernel(%arg0: i32, %arg1: memref<3xf32, #tpu.memory_space<smem>>, %arg2: memref<32x16xbf16, #tpu.memory_space<vmem>>, %arg3: memref<16x32xbf16, #tpu.memory_space<vmem>>, %arg4: memref<1x32xf32, #tpu.memory_space<vmem>>, %arg5: memref<2x32x32xbf16, #tpu.memory_space<vmem>>, %arg6: memref<2x1x32xf32, #tpu.memory_space<vmem>>, %arg7: memref<32x8xbf16, #tpu.memory_space<vmem>>, %arg8: memref<1x8xf32, #tpu.memory_space<vmem>>, %arg9: memref<32x8xf32, #tpu.memory_space<vmem>>, %arg10: memref<32x8xbf16, #tpu.memory_space<vmem>>, %arg11: memref<3x32x32xbf16, #tpu.memory_space<vmem>>) attributes {dimension_semantics = [#tpu.dimension_semantics<parallel>], iteration_bounds = array<i64: 1>, scalar_prefetch = 0 : i64, scratch_operands = 0 : i64, tpu.core_type = #tpu.core_type<tc>, window_params = [{transform_indices = @transform_0, window_bounds = array<i64: 3>}, {transform_indices = @transform_1, window_bounds = array<i64: 32, 16>}, {pipeline_mode = #tpu.pipeline_mode<synchronous>, transform_indices = @transform_2, window_bounds = array<i64: 16, 32>}, {pipeline_mode = #tpu.pipeline_mode<synchronous>, transform_indices = @transform_3, window_bounds = array<i64: 1, 32>}, {pipeline_mode = #tpu.pipeline_mode<synchronous>, transform_indices = @transform_4, window_bounds = array<i64: 2, 32, 32>}, {pipeline_mode = #tpu.pipeline_mode<synchronous>, transform_indices = @transform_5, window_bounds = array<i64: 2, 1, 32>}, {pipeline_mode = #tpu.pipeline_mode<synchronous>, transform_indices = @transform_6, window_bounds = array<i64: 32, 8>}, {pipeline_mode = #tpu.pipeline_mode<synchronous>, transform_indices = @transform_7, window_bounds = array<i64: 1, 8>}, {transform_indices = @transform_8, window_bounds = array<i64: 32, 8>}, {transform_indices = @transform_9, window_bounds = array<i64: 32, 8>}, {transform_indices = @transform_10, window_bounds = array<i64: 3, 32, 32>}]} {
    %c0 = arith.constant 0 : index
    %c0_0 = arith.constant 0 : index
    %0 = vector.load %arg2[%c0, %c0_0] : memref<32x16xbf16, #tpu.memory_space<vmem>>, vector<32x16xbf16>
    %c0_1 = arith.constant 0 : index
    %c0_2 = arith.constant 0 : index
    %1 = vector.load %arg3[%c0_1, %c0_2] : memref<16x32xbf16, #tpu.memory_space<vmem>>, vector<16x32xbf16>
    %cst = arith.constant dense<0.000000e+00> : vector<32x32xf32>
    %2 = tpu.matmul %0, %1, %cst {dimension_numbers = #tpu.dot_dimension_numbers<[1], [0], [0], [1], [0, 0, 1, 1], [], []>} : vector<32x16xbf16>, vector<16x32xbf16>, vector<32x32xf32> -> vector<32x32xf32>
    %c0_3 = arith.constant 0 : index
    %c0_4 = arith.constant 0 : index
    %3 = vector.load %arg4[%c0_3, %c0_4] : memref<1x32xf32, #tpu.memory_space<vmem>>, vector<1x32xf32>
    %4 = vector.broadcast %3 : vector<1x32xf32> to vector<32x32xf32>
    %5 = arith.addf %2, %4 : vector<32x32xf32>
    %6 = arith.truncf %5 : vector<32x32xf32> to vector<32x32xbf16>
    %c0_5 = arith.constant 0 : index
    %c0_6 = arith.constant 0 : index
    %c0_7 = arith.constant 0 : index
    %7 = vector.load %arg11[%c0_5, %c0_6, %c0_7] : memref<3x32x32xbf16, #tpu.memory_space<vmem>>, vector<1x32x32xbf16>
    %8 = vector.shape_cast %7 : vector<1x32x32xbf16> to vector<32x32xbf16>
    %9 = vector.shape_cast %6 : vector<32x32xbf16> to vector<1x32x32xbf16>
    tpu.vector_store %arg11[%c0_5, %c0_6, %c0_7], %9 {strides = array<i32>} : memref<3x32x32xbf16, #tpu.memory_space<vmem>>, vector<1x32x32xbf16>,
    %c0_8 = arith.constant 0 : index
    %10 = memref.load %arg1[%c0_8] : memref<3xf32, #tpu.memory_space<smem>>
    %11 = vector.broadcast %10 : f32 to vector<32x32xf32>
    %12 = arith.mulf %5, %11 : vector<32x32xf32>
    %13 = arith.truncf %5 : vector<32x32xf32> to vector<32x32xbf16>
    %c0_9 = arith.constant 0 : index
    %c0_10 = arith.constant 0 : index
    %c0_11 = arith.constant 0 : index
    %14 = vector.load %arg5[%c0_9, %c0_10, %c0_11] : memref<2x32x32xbf16, #tpu.memory_space<vmem>>, vector<1x32x32xbf16>
    %15 = vector.shape_cast %14 : vector<1x32x32xbf16> to vector<32x32xbf16>
    %cst_12 = arith.constant dense<0.000000e+00> : vector<32x32xf32>
    %16 = tpu.matmul %13, %15, %cst_12 {dimension_numbers = #tpu.dot_dimension_numbers<[1], [0], [0], [1], [0, 0, 1, 1], [], []>} : vector<32x32xbf16>, vector<32x32xbf16>, vector<32x32xf32> -> vector<32x32xf32>
    %c0_13 = arith.constant 0 : index
    %c0_14 = arith.constant 0 : index
    %c0_15 = arith.constant 0 : index
    %17 = vector.load %arg6[%c0_13, %c0_14, %c0_15] : memref<2x1x32xf32, #tpu.memory_space<vmem>>, vector<1x1x32xf32>
    %18 = vector.shape_cast %17 : vector<1x1x32xf32> to vector<1x32xf32>
    %19 = vector.broadcast %18 : vector<1x32xf32> to vector<32x32xf32>
    %20 = arith.addf %16, %19 : vector<32x32xf32>
    %cst_16 = arith.constant 0.000000e+00 : f32
    %21 = vector.broadcast %cst_16 : f32 to vector<32x32xf32>
    %22 = arith.maximumf %20, %21 : vector<32x32xf32>
    %23 = arith.truncf %22 : vector<32x32xf32> to vector<32x32xbf16>
    %c1 = arith.constant 1 : index
    %c0_17 = arith.constant 0 : index
    %c0_18 = arith.constant 0 : index
    %24 = vector.load %arg11[%c1, %c0_17, %c0_18] : memref<3x32x32xbf16, #tpu.memory_space<vmem>>, vector<1x32x32xbf16>
    %25 = vector.shape_cast %24 : vector<1x32x32xbf16> to vector<32x32xbf16>
    %26 = vector.shape_cast %23 : vector<32x32xbf16> to vector<1x32x32xbf16>
    tpu.vector_store %arg11[%c1, %c0_17, %c0_18], %26 {strides = array<i32>} : memref<3x32x32xbf16, #tpu.memory_space<vmem>>, vector<1x32x32xbf16>,
    %c1_19 = arith.constant 1 : index
    %27 = memref.load %arg1[%c1_19] : memref<3xf32, #tpu.memory_space<smem>>
    %28 = vector.broadcast %27 : f32 to vector<32x32xf32>
    %29 = arith.mulf %22, %28 : vector<32x32xf32>
    %30 = arith.addf %12, %29 : vector<32x32xf32>
    %31 = arith.truncf %22 : vector<32x32xf32> to vector<32x32xbf16>
    %c1_20 = arith.constant 1 : index
    %c0_21 = arith.constant 0 : index
    %c0_22 = arith.constant 0 : index
    %32 = vector.load %arg5[%c1_20, %c0_21, %c0_22] : memref<2x32x32xbf16, #tpu.memory_space<vmem>>, vector<1x32x32xbf16>
    %33 = vector.shape_cast %32 : vector<1x32x32xbf16> to vector<32x32xbf16>
    %cst_23 = arith.constant dense<0.000000e+00> : vector<32x32xf32>
    %34 = tpu.matmul %31, %33, %cst_23 {dimension_numbers = #tpu.dot_dimension_numbers<[1], [0], [0], [1], [0, 0, 1, 1], [], []>} : vector<32x32xbf16>, vector<32x32xbf16>, vector<32x32xf32> -> vector<32x32xf32>
    %c1_24 = arith.constant 1 : index
    %c0_25 = arith.constant 0 : index
    %c0_26 = arith.constant 0 : index
    %35 = vector.load %arg6[%c1_24, %c0_25, %c0_26] : memref<2x1x32xf32, #tpu.memory_space<vmem>>, vector<1x1x32xf32>
    %36 = vector.shape_cast %35 : vector<1x1x32xf32> to vector<1x32xf32>
    %37 = vector.broadcast %36 : vector<1x32xf32> to vector<32x32xf32>
    %38 = arith.addf %34, %37 : vector<32x32xf32>
    %cst_27 = arith.constant 0.000000e+00 : f32
    %39 = vector.broadcast %cst_27 : f32 to vector<32x32xf32>
    %40 = arith.maximumf %38, %39 : vector<32x32xf32>
    %41 = arith.truncf %40 : vector<32x32xf32> to vector<32x32xbf16>
    %c2 = arith.constant 2 : index
    %c0_28 = arith.constant 0 : index
    %c0_29 = arith.constant 0 : index
    %42 = vector.load %arg11[%c2, %c0_28, %c0_29] : memref<3x32x32xbf16, #tpu.memory_space<vmem>>, vector<1x32x32xbf16>
    %43 = vector.shape_cast %42 : vector<1x32x32xbf16> to vector<32x32xbf16>
    %44 = vector.shape_cast %41 : vector<32x32xbf16> to vector<1x32x32xbf16>
    tpu.vector_store %arg11[%c2, %c0_28, %c0_29], %44 {strides = array<i32>} : memref<3x32x32xbf16, #tpu.memory_space<vmem>>, vector<1x32x32xbf16>,
    %c2_30 = arith.constant 2 : index
    %45 = memref.load %arg1[%c2_30] : memref<3xf32, #tpu.memory_space<smem>>
    %46 = vector.broadcast %45 : f32 to vector<32x32xf32>
    %47 = arith.mulf %40, %46 : vector<32x32xf32>
    %48 = arith.addf %30, %47 : vector<32x32xf32>
    %49 = arith.truncf %48 : vector<32x32xf32> to vector<32x32xbf16>
    %c0_31 = arith.constant 0 : index
    %c0_32 = arith.constant 0 : index
    %50 = vector.load %arg7[%c0_31, %c0_32] : memref<32x8xbf16, #tpu.memory_space<vmem>>, vector<32x8xbf16>
    %cst_33 = arith.constant dense<0.000000e+00> : vector<32x8xf32>
    %51 = tpu.matmul %49, %50, %cst_33 {dimension_numbers = #tpu.dot_dimension_numbers<[1], [0], [0], [1], [0, 0, 1, 1], [], []>} : vector<32x32xbf16>, vector<32x8xbf16>, vector<32x8xf32> -> vector<32x8xf32>
    %c0_34 = arith.constant 0 : index
    %c0_35 = arith.constant 0 : index
    %52 = vector.load %arg8[%c0_34, %c0_35] : memref<1x8xf32, #tpu.memory_space<vmem>>, vector<1x8xf32>
    %53 = vector.broadcast %52 : vector<1x8xf32> to vector<32x8xf32>
    %54 = arith.addf %51, %53 : vector<32x8xf32>
    %55 = arith.truncf %54 : vector<32x8xf32> to vector<32x8xbf16>
    %c0_36 = arith.constant 0 : index
    %c0_37 = arith.constant 0 : index
    %56 = vector.load %arg10[%c0_36, %c0_37] : memref<32x8xbf16, #tpu.memory_space<vmem>>, vector<32x8xbf16>
    tpu.vector_store %arg10[%c0_36, %c0_37], %55 {strides = array<i32>} : memref<32x8xbf16, #tpu.memory_space<vmem>>, vector<32x8xbf16>,
    %cst_38 = arith.constant dense<0xFF800000> : vector<32xf32>
    %57 = vector.multi_reduction <maximumf>, %54, %cst_38 [1] : vector<32x8xf32> to vector<32xf32>
    %58 = vector.shape_cast %57 : vector<32xf32> to vector<32x1xf32>
    %59 = vector.broadcast %58 : vector<32x1xf32> to vector<32x8xf32>
    %60 = arith.subf %54, %59 : vector<32x8xf32>
    %61 = math.exp %60 : vector<32x8xf32>
    %cst_39 = arith.constant dense<0.000000e+00> : vector<32xf32>
    %62 = vector.multi_reduction <add>, %61, %cst_39 [1] : vector<32x8xf32> to vector<32xf32>
    %63 = vector.shape_cast %62 : vector<32xf32> to vector<32x1xf32>
    %64 = math.log %63 : vector<32x1xf32>
    %65 = vector.broadcast %64 : vector<32x1xf32> to vector<32x8xf32>
    %66 = arith.subf %60, %65 : vector<32x8xf32>
    %c0_40 = arith.constant 0 : index
    %c0_41 = arith.constant 0 : index
    %67 = vector.load %arg9[%c0_40, %c0_41] : memref<32x8xf32, #tpu.memory_space<vmem>>, vector<32x8xf32>
    tpu.vector_store %arg9[%c0_40, %c0_41], %66 {strides = array<i32>} : memref<32x8xf32, #tpu.memory_space<vmem>>, vector<32x8xf32>,
    return
  }
  func.func @transform_0(%arg0: i32) -> i32 {
    %c0_i32 = arith.constant 0 : i32
    %c0_i32_0 = arith.constant 0 : i32
    return %c0_i32 : i32
  }
  func.func @transform_1(%arg0: i32) -> (i32, i32) {
    %c0_i32 = arith.constant 0 : i32
    %c0_i32_0 = arith.constant 0 : i32
    return %arg0, %c0_i32 : i32, i32
  }
  func.func @transform_2(%arg0: i32) -> (i32, i32) {
    %c0_i32 = arith.constant 0 : i32
    %c0_i32_0 = arith.constant 0 : i32
    %c0_i32_1 = arith.constant 0 : i32
    return %c0_i32, %c0_i32_0 : i32, i32
  }
  func.func @transform_3(%arg0: i32) -> (i32, i32) {
    %c0_i32 = arith.constant 0 : i32
    %c0_i32_0 = arith.constant 0 : i32
    %c0_i32_1 = arith.constant 0 : i32
    return %c0_i32, %c0_i32_0 : i32, i32
  }
  func.func @transform_4(%arg0: i32) -> (i32, i32, i32) {
    %c0_i32 = arith.constant 0 : i32
    %c0_i32_0 = arith.constant 0 : i32
    %c0_i32_1 = arith.constant 0 : i32
    %c0_i32_2 = arith.constant 0 : i32
    return %c0_i32, %c0_i32_0, %c0_i32_1 : i32, i32, i32
  }
  func.func @transform_5(%arg0: i32) -> (i32, i32, i32) {
    %c0_i32 = arith.constant 0 : i32
    %c0_i32_0 = arith.constant 0 : i32
    %c0_i32_1 = arith.constant 0 : i32
    %c0_i32_2 = arith.constant 0 : i32
    return %c0_i32, %c0_i32_0, %c0_i32_1 : i32, i32, i32
  }
  func.func @transform_6(%arg0: i32) -> (i32, i32) {
    %c0_i32 = arith.constant 0 : i32
    %c0_i32_0 = arith.constant 0 : i32
    %c0_i32_1 = arith.constant 0 : i32
    return %c0_i32, %c0_i32_0 : i32, i32
  }
  func.func @transform_7(%arg0: i32) -> (i32, i32) {
    %c0_i32 = arith.constant 0 : i32
    %c0_i32_0 = arith.constant 0 : i32
    %c0_i32_1 = arith.constant 0 : i32
    return %c0_i32, %c0_i32_0 : i32, i32
  }
  func.func @transform_8(%arg0: i32) -> (i32, i32) {
    %c0_i32 = arith.constant 0 : i32
    %c0_i32_0 = arith.constant 0 : i32
    return %arg0, %c0_i32 : i32, i32
  }
  func.func @transform_9(%arg0: i32) -> (i32, i32) {
    %c0_i32 = arith.constant 0 : i32
    %c0_i32_0 = arith.constant 0 : i32
    return %arg0, %c0_i32 : i32, i32
  }
  func.func @transform_10(%arg0: i32) -> (i32, i32, i32) {
    %c0_i32 = arith.constant 0 : i32
    %c0_i32_0 = arith.constant 0 : i32
    %c0_i32_1 = arith.constant 0 : i32
    return %c0_i32, %arg0, %c0_i32_0 : i32, i32, i32
  }
}

</mosaic_0001>

<bundles_post_ra>
// kernel: tpu_custom_call.1
= control target key start
LH: loop header
LB: loop body
LE: loop exit
PB: predicated region body
PF: predicated region fallthrough
CT: control target
= control target key end

     0   :  { %16 = vsyncpa [#allocation4], 0  ;;  %s918_s0 = inlined_call_operand.vmem [shape: f32[3], index: 0, kind: input, shape index: {}]   ;;  %s919_s1 = inlined_call_operand.vmem [shape: bf16[32,16], index: 1, kind: input, shape index: {}]   ;;  %s920_s2 = inlined_call_operand.vmem [shape: bf16[16,32], index: 2, kind: input, shape index: {}]   ;;  %s921_s3 = inlined_call_operand.vmem [shape: f32[1,32], index: 3, kind: input, shape index: {}]   ;;  %s922_s4 = inlined_call_operand.vmem [shape: bf16[2,32,32], index: 4, kind: input, shape index: {}]   ;;  %s923_s5 = inlined_call_operand.vmem [shape: f32[2,1,32], index: 5, kind: input, shape index: {}]   ;;  %s924_s6 = inlined_call_operand.vmem [shape: bf16[32,8], index: 6, kind: input, shape index: {}]   ;;  %s925_s7 = inlined_call_operand.vmem [shape: f32[1,8], index: 7, kind: input, shape index: {}]   ;;  %s926_s8 = inlined_call_operand.vmem [shape: f32[32,8], index: 8, kind: output, shape index: {0}]   ;;  %s927_s9 = inlined_call_operand.vmem [shape: bf16[32,8], index: 9, kind: output, shape index: {1}]   ;;  %s928_s10 = inlined_call_operand.hbm [shape: bf16[3,32,32], index: 10, kind: output, shape index: {2}]  }
   0x1   :  { %17 = vsyncpa [#allocation3], 0  ;;  %s24_s15 = sshll.u32 %s918_s0, 4  ;;  %s25_s15 = int_to_ptr.vmem [resolvable:$true] %s24_s15 }
   0x2   :  { %s701_s16 = scalar_lea.vmem %s25_s15, 16  ;;  %p706_p1 = scmp.lt.s32.totalorder %s25_s15, %s25_s15 }
   0x3   :  { %p702_p0 = scmp.ne.s32.totalorder %s25_s15, %s701_s16  ;;  %p707_p2 = scmp.lt.s32.totalorder %s701_s16, %s701_s16 }
   0x5   :  { %p708_p3 = por %p707_p2, %p706_p1 }
   0x7   :  { %p709_p4 = pnand %p708_p3, %p702_p0 }
   0x9   :  { %712 = shalt.err (!%p709_p4)
}
   0xa   :  { %s739_s17 = smov [#allocation2]  }
   0xb   :  { %27 = dma.vmem_to_smem %s25_s15, 16, %s739_s17, [#allocation4]  }
   0xc   :  { %735 = dma.done.wait [#allocation4], 16  }
   0xd   :  { %736 = vsyncadd [#allocation4], 4294967280 }
   0xe   :  { %45 = sfence }
   0xf   :  { %v676_v0 = vld [vmem:[%s920_s2] sm:$0xff]   ;;  %vm76_vm0 = vcmask 130048   ;;  %v678_v2 = vld [vmem:[%s919_s1 + $0x8] sm:$0xff]   ;;  %vm148_vm1 = vcmask 257024   ;;  %vm182_vm2 = vcmask 261120   ;;  %v681_v20 = vld [vmem:[%s922_s4 + $0x10] sm:$0xff]  }
  0x10   :  { %v677_v1 = vld [vmem:[%s919_s1] sm:$0xff]   ;;  %642 = vmatprep.subr.bf16.mxu0 %v676_v0  ;;  %v680_v4 = vld [vmem:[%s922_s4 + $0x8] sm:$0xff]   ;;  %v682_v21 = vld [vmem:[%s922_s4 + $0x18] sm:$0xff]   ;;  %s153_s30 = sld [smem:[#allocation2]]  ;;  %s586_s11 = sld [smem:[#allocation2 + $0x1]]  ;;  %vm489_vm3 = vcmask 64512  }
  0x11   :  { %643 = vmatpush3.bf16.msra.mxu0 %v676_v0  ;;  %644 = vmatprep.mubr.msk.bf16.mxu0 %vm76_vm0, %v677_v1  ;;  %v679_v3 = vld [vmem:[%s922_s4] sm:$0xff]   ;;  %v684_v56 = vld [vmem:[%s924_s6 + $0x8] sm:$0xff]   ;;  %s601_s17 = sld [smem:[#allocation2 + $0x2]]  ;;  %vm484_vm4 = vcmask 60416  }
  0x12   :  { %648 = vmatprep.subr.bf16.mxu1 %v679_v3  ;;  %v567_v5 = vld [vmem:[%s921_s3] ss:$0 sm:$0xff]  ;;  %656 = vmatprep.subr.bf16.mxu0 %v681_v20  ;;  %v592_v57 = vld [vmem:[%s923_s5 + $0x1] ss:$0 sm:$0xff] }
  0x13   :  { %649 = vmatpush3.bf16.msra.mxu1 %v679_v3  ;;  %v577_v22 = vld [vmem:[%s923_s5] ss:$0 sm:$0xff] }
  0x14   :  { %645 = vmatmul.mubr.msk.bf16.vlgmr.msra.gmra.mrb[0].mxu0 %vm76_vm0, %v678_v2  ;;  %650 = vmatprep.subr.bf16.mxu1 %v680_v4  ;;  %v683_v55 = vld [vmem:[%s924_s6] sm:$0xff]  }
  0x15   :  { %657 = vmatpush3.bf16.msra.mxu0 %v681_v20 }
  0x16   :  { %658 = vmatprep.subr.bf16.mxu0 %v682_v21  ;;  %v154_v24 = vstv %s153_s30  ;;  %v264_v27 = vstv %s586_s11 }
  0x17   :  { %651 = vmatpush3.bf16.msra.mxu1 %v680_v4  ;;  %v379_v61 = vstv %s601_s17 }
  0x18   :  { %664 = vmatprep.subr.bf16.mxu1 %v683_v55 }
  0x19   :  { %659 = vmatpush3.bf16.msra.mxu0 %v682_v21  ;;  %v602_v21 = vld [vmem:[%s925_s7] ss:$0 sm:$0xff] }
  0xe7   :  { %v646_v6 = vpop.f32.mrb[0].mxu0 }
  0xe8   :  { %v126_v7 = vadd.f32 %v646_v6, %v567_v5  ;;  %v117_v8 = vpop.f32.mrb[1].mxu0 }
  0xe9   :  { %v118_v9 = vadd.f32 %v567_v5, %v117_v8  ;;  %v647_v10 = vpop.f32.mrb[2].mxu0 }
  0xea   :  { %v613_v11 = vpack.c.bf16 %v126_v7, %v126_v7  ;;  %v129_v12 = vadd.f32 %v647_v10, %v567_v5  ;;  %v120_v13 = vpop.f32.mrb[3].mxu0  ;;  %v157_v33 = vmul.f32 %v154_v24, %v126_v7 }
  0xeb   :  { %v611_v14 = vpack.c.bf16 %v118_v9, %v118_v9  ;;  %v121_v15 = vadd.f32 %v567_v5, %v120_v13  ;;  %v155_v34 = vmul.f32 %v154_v24, %v118_v9 }
  0xec   :  { %151 = vst.msk [vmem:[#allocation5 + $0x8] sm:$0xf] %vm148_vm1, %v613_v11  ;;  %v133_v16 = vpack.c.bf16 %v129_v12, %v126_v7  ;;  %v614_v17 = vpack.c.bf16 %v129_v12, %v129_v12  ;;  %v158_v37 = vmul.f32 %v154_v24, %v129_v12 }
  0xed   :  { %149 = vst.msk [vmem:[#allocation5] sm:$0xf] %vm148_vm1, %v611_v14  ;;  %v612_v18 = vpack.c.bf16 %v121_v15, %v121_v15  ;;  %v132_v19 = vpack.c.bf16 %v121_v15, %v118_v9  ;;  %v156_v41 = vmul.f32 %v154_v24, %v121_v15 }
  0xee   :  { %152 = vst.msk [vmem:[#allocation5 + $0xc] sm:$0xf] %vm148_vm1, %v614_v17 }
  0xef   :  { %150 = vst.msk [vmem:[#allocation5 + $0x4] sm:$0xf] %vm148_vm1, %v612_v18  ;;  %652 = vmatprep.mubr.msk.bf16.mxu1 %vm182_vm2, %v132_v19 }
  0xf0   :  { %653 = vmatmul.mubr.msk.bf16.vlgmr.msra.gmra.mrb[0].mxu1 %vm182_vm2, %v133_v16 }
  0xf1   :  { %665 = vmatpush3.bf16.msra.mxu1 %v683_v55 }
  0xf2   :  { %666 = vmatprep.subr.bf16.mxu1 %v684_v56 }
  0xf5   :  { %667 = vmatpush3.bf16.msra.mxu1 %v684_v56 }
 0x1c3   :  { %v654_v23 = vpop.f32.mrb[0].mxu1 }
 0x1c4   :  { %v232_v25 = vadd.f32 %v654_v23, %v577_v22  ;;  %v223_v26 = vpop.f32.mrb[1].mxu1 }
 0x1c5   :  { %v224_v28 = vadd.f32 %v577_v22, %v223_v26  ;;  %v655_v29 = vpop.f32.mrb[2].mxu1 }
 0x1c6   :  { %v240_v30 = vmax.f32 %v232_v25, 0.0  ;;  %v235_v31 = vadd.f32 %v655_v29, %v577_v22  ;;  %v226_v32 = vpop.f32.mrb[3].mxu1 }
 0x1c7   :  { %v238_v35 = vmax.f32 %v224_v28, 0.0  ;;  %v227_v36 = vadd.f32 %v577_v22, %v226_v32 }
 0x1c8   :  { %v617_v38 = vpack.c.bf16 %v240_v30, %v240_v30  ;;  %v267_v39 = vmul.f32 %v264_v27, %v240_v30  ;;  %v241_v40 = vmax.f32 %v235_v31, 0.0 }
 0x1c9   :  { %v615_v42 = vpack.c.bf16 %v238_v35, %v238_v35  ;;  %v265_v43 = vmul.f32 %v264_v27, %v238_v35  ;;  %v239_v44 = vmax.f32 %v227_v36, 0.0 }
 0x1ca   :  { %261 = vst.msk [vmem:[#allocation5 + $0x18] sm:$0xf] %vm148_vm1, %v617_v38  ;;  %v243_v45 = vpack.c.bf16 %v241_v40, %v240_v30  ;;  %v618_v46 = vpack.c.bf16 %v241_v40, %v241_v40  ;;  %v268_v47 = vmul.f32 %v264_v27, %v241_v40  ;;  %v271_v48 = vadd.f32 %v267_v39, %v157_v33 }
 0x1cb   :  { %259 = vst.msk [vmem:[#allocation5 + $0x10] sm:$0xf] %vm148_vm1, %v615_v42  ;;  %v242_v49 = vpack.c.bf16 %v239_v44, %v238_v35  ;;  %v616_v50 = vpack.c.bf16 %v239_v44, %v239_v44  ;;  %v266_v51 = vmul.f32 %v264_v27, %v239_v44  ;;  %v269_v52 = vadd.f32 %v265_v43, %v155_v34 }
 0x1cc   :  { %262 = vst.msk [vmem:[#allocation5 + $0x1c] sm:$0xf] %vm148_vm1, %v618_v46  ;;  %v272_v53 = vadd.f32 %v268_v47, %v158_v37 }
 0x1cd   :  { %260 = vst.msk [vmem:[#allocation5 + $0x14] sm:$0xf] %vm148_vm1, %v616_v50  ;;  %660 = vmatprep.mubr.msk.bf16.mxu0 %vm182_vm2, %v242_v49  ;;  %v270_v54 = vadd.f32 %v266_v51, %v156_v41 }
 0x1ce   :  { %661 = vmatmul.mubr.msk.bf16.vlgmr.msra.gmra.mrb[4].mxu0 %vm182_vm2, %v243_v45 }
 0x2a1   :  { %v662_v58 = vpop.f32.mrb[4].mxu0 }
 0x2a2   :  { %v347_v59 = vadd.f32 %v662_v58, %v592_v57  ;;  %v338_v60 = vpop.f32.mrb[5].mxu0 }
 0x2a3   :  { %v339_v62 = vadd.f32 %v592_v57, %v338_v60  ;;  %v663_v63 = vpop.f32.mrb[6].mxu0 }
 0x2a4   :  { %v355_v0 = vmax.f32 %v347_v59, 0.0  ;;  %v350_v1 = vadd.f32 %v663_v63, %v592_v57  ;;  %v341_v2 = vpop.f32.mrb[7].mxu0 }
 0x2a5   :  { %v353_v3 = vmax.f32 %v339_v62, 0.0  ;;  %v342_v4 = vadd.f32 %v592_v57, %v341_v2 }
 0x2a6   :  { %v621_v5 = vpack.c.bf16 %v355_v0, %v355_v0  ;;  %v382_v6 = vmul.f32 %v379_v61, %v355_v0  ;;  %v356_v7 = vmax.f32 %v350_v1, 0.0 }
 0x2a7   :  { %v619_v8 = vpack.c.bf16 %v353_v3, %v353_v3  ;;  %v380_v9 = vmul.f32 %v379_v61, %v353_v3  ;;  %v354_v10 = vmax.f32 %v342_v4, 0.0 }
 0x2a8   :  { %376 = vst.msk [vmem:[#allocation5 + $0x28] sm:$0xf] %vm148_vm1, %v621_v5  ;;  %v386_v11 = vadd.f32 %v382_v6, %v271_v48  ;;  %v622_v12 = vpack.c.bf16 %v356_v7, %v356_v7  ;;  %v383_v13 = vmul.f32 %v379_v61, %v356_v7 }
 0x2a9   :  { %374 = vst.msk [vmem:[#allocation5 + $0x20] sm:$0xf] %vm148_vm1, %v619_v8  ;;  %v384_v14 = vadd.f32 %v380_v9, %v269_v52  ;;  %v620_v15 = vpack.c.bf16 %v354_v10, %v354_v10  ;;  %v381_v16 = vmul.f32 %v379_v61, %v354_v10 }
 0x2aa   :  { %377 = vst.msk [vmem:[#allocation5 + $0x2c] sm:$0xf] %vm148_vm1, %v622_v12  ;;  %v387_v17 = vadd.f32 %v383_v13, %v272_v53 }
 0x2ab   :  { %375 = vst.msk [vmem:[#allocation5 + $0x24] sm:$0xf] %vm148_vm1, %v620_v15  ;;  %v385_v18 = vadd.f32 %v381_v16, %v270_v54 }
 0x2ac   :  { %v389_v19 = vpack.c.bf16 %v387_v17, %v386_v11 }
 0x2ad   :  { %v388_v20 = vpack.c.bf16 %v385_v18, %v384_v14 }
 0x2af   :  { %668 = vmatprep.mubr.msk.bf16.mxu1 %vm182_vm2, %v388_v20 }
 0x2b0   :  { %669 = vmatmul.mubr.msk.bf16.vlgmr.msra.gmra.mrb[4].mxu1 %vm182_vm2, %v389_v19 }
 0x383   :  { %v670_v22 = vpop.f32.mrb[4].mxu1 }
 0x384   :  { %v462_v23 = vadd.f32 %v670_v22, %v602_v21  ;;  %v453_v24 = vpop.f32.mrb[5].mxu1 }
 0x385   :  { %v454_v25 = vadd.f32 %v602_v21, %v453_v24  ;;  %v671_v26 = vpop.f32.mrb[6].mxu1 }
 0x386   :  { %v625_v27 = vpack.c.bf16 %v462_v23, %v462_v23  ;;  %v465_v28 = vadd.f32 %v671_v26, %v602_v21  ;;  %v456_v29 = vpop.f32.mrb[7].mxu1  ;;  %v496_v30 = vsel %vm489_vm3, %v462_v23, -inf }
 0x387   :  { %v623_v31 = vpack.c.bf16 %v454_v25, %v454_v25  ;;  %v457_v32 = vadd.f32 %v602_v21, %v456_v29  ;;  %497 = vmax.xlane.f32.xlu1 %v496_v30  ;;  %v490_v33 = vsel %vm489_vm3, %v454_v25, -inf }
 0x388   :  { %487 = vst.msk [vmem:[%s927_s9 + $0x8] sm:$0xf] %vm484_vm4, %v625_v27  ;;  %v626_v34 = vpack.c.bf16 %v465_v28, %v465_v28  ;;  %491 = vmax.xlane.f32.xlu0 %v490_v33  ;;  %v499_v36 = vsel %vm489_vm3, %v465_v28, -inf }
 0x389   :  { %485 = vst.msk [vmem:[%s927_s9] sm:$0xf] %vm484_vm4, %v623_v31  ;;  %v624_v35 = vpack.c.bf16 %v457_v32, %v457_v32  ;;  %v493_v37 = vsel %vm489_vm3, %v457_v32, -inf }
 0x38a   :  { %488 = vst.msk [vmem:[%s927_s9 + $0xc] sm:$0xf] %vm484_vm4, %v626_v34 }
 0x38b   :  { %486 = vst.msk [vmem:[%s927_s9 + $0x4] sm:$0xf] %vm484_vm4, %v624_v35  ;;  %500 = vmax.xlane.f32.xlu1 %v499_v36  ;;  %s740_s9 = smov [#allocation5]  }
 0x38c   :  { %494 = vmax.xlane.f32.xlu0 %v493_v37  ;;  %s551_s25 = sshll.u32 %s740_s9, 4  ;;  %s552_s25 = int_to_ptr.vmem [resolvable:$true] %s551_s25 }
 0x38d   :  { %s713_s26 = scalar_lea.vmem %s552_s25, 768  ;;  %p718_p6 = scmp.lt.s32.totalorder %s552_s25, %s552_s25 }
 0x38e   :  { %p714_p5 = scmp.ne.s32.totalorder %s552_s25, %s713_s26  ;;  %p719_p7 = scmp.lt.s32.totalorder %s713_s26, %s713_s26 }
 0x390   :  { %p720_p8 = por %p719_p7, %p718_p6 }
 0x392   :  { %p721_p9 = pnand %p720_p8, %p714_p5 }
 0x414   :  { %v498_v38 = vpop.xlane.xlu1 %497 }
 0x415   :  { %v878_v39 = vsub.f32 %v462_v23, %v498_v38  ;;  %v492_v40 = vpop.xlane.xlu0 %491 }
 0x416   :  { %v502_v41 = vsub.f32 %v454_v25, %v492_v40 }
 0x417   :  { %v510_v42 = vmul.f32 1.442695, %v878_v39 }
 0x418   :  { %v506_v43 = vmul.f32 1.442695, %v502_v41  ;;  %v501_v44 = vpop.xlane.xlu1 %500 }
 0x419   :  { %v881_v45 = vsub.f32 %v465_v28, %v501_v44  ;;  %v495_v46 = vpop.xlane.xlu0 %494 }
 0x41a   :  { %685 = vpow2.f32 %v506_v43  ;;  %v503_v47 = vsub.f32 %v457_v32, %v495_v46 }
 0x41b   :  { %687 = vpow2.f32 %v510_v42  ;;  %v512_v48 = vmul.f32 1.442695, %v881_v45 }
 0x41c   :  { %v508_v49 = vmul.f32 1.442695, %v503_v47 }
 0x41e   :  { %689 = vpow2.f32 %v508_v49 }
 0x41f   :  { %691 = vpow2.f32 %v512_v48 }
 0x424   :  { %v686_v50 = vpop.eup %685 }
 0x425   :  { %v514_v51 = vsel %vm489_vm3, %v686_v50, 0.0  ;;  %v688_v52 = vpop.eup %687 }
 0x426   :  { %515 = vadd.xlane.f32.xlu0 %v514_v51  ;;  %v520_v54 = vsel %vm489_vm3, %v688_v52, 0.0 }
 0x428   :  { %v690_v53 = vpop.eup %689 }
 0x429   :  { %v517_v55 = vsel %vm489_vm3, %v690_v53, 0.0  ;;  %v692_v56 = vpop.eup %691 }
 0x42a   :  { %521 = vadd.xlane.f32.xlu0 %v520_v54  ;;  %518 = vadd.xlane.f32.xlu1 %v517_v55  ;;  %v523_v57 = vsel %vm489_vm3, %v692_v56, 0.0 }
 0x42e   :  { %524 = vadd.xlane.f32.xlu1 %v523_v57 }
 0x42f   :  { %724 = shalt.err (!%p721_p9)
}
 0x430   :  { %s725_s3 = scalar_lea.hbm %s928_s10, 768 }
 0x431   :  { %p726_p10 = scmp.ne.s32.totalorder %s928_s10, %s725_s3  ;;  %p729_p11 = scmp.lt.u32.totalorder %s725_s3, %s928_s10 }
 0x433   :  { %p731_p12 = pnand %p729_p11, %p726_p10 }
 0x435   :  { %734 = shalt.err (!%p731_p12)
}
 0x436   :  { %s741_s12 = smov 64   ;;  %s742_s13 = smov 4  }
 0x437   :  { %557 = dma.vmem_to_hbm [thread:$0]  %s552_s25, 768, %s928_s10, [#allocation3], %s741_s12, %s741_s12, %s742_s13  }
 0x4b3   :  { %v516_v58 = vpop.xlane.xlu0 %515 }
 0x4b4   :  { %693 = vlog2.f32 %v516_v58 }
 0x4b7   :  { %v519_v59 = vpop.xlane.xlu1 %518  ;;  %v522_v60 = vpop.xlane.xlu0 %521 }
 0x4b8   :  { %695 = vlog2.f32 %v519_v59 }
 0x4b9   :  { %697 = vlog2.f32 %v522_v60 }
 0x4bb   :  { %v525_v61 = vpop.xlane.xlu1 %524 }
 0x4bc   :  { %699 = vlog2.f32 %v525_v61 }
 0x4be   :  { %v694_v62 = vpop.eup %693 }
 0x4bf   :  { %v527_v63 = vmul.f32 0.6931472, %v694_v62 }
 0x4c1   :  { %v534_v0 = vsub.f32 %v502_v41, %v527_v63 }
 0x4c2   :  { %v696_v1 = vpop.eup %695 }
 0x4c3   :  { %v698_v2 = vpop.eup %697  ;;  %538 = vst.msk [vmem:[%s926_s8] sm:$0xff] %vm489_vm3, %v534_v0  ;;  %v529_v3 = vmul.f32 0.6931472, %v696_v1 }
 0x4c4   :  { %v531_v4 = vmul.f32 0.6931472, %v698_v2 }
 0x4c5   :  { %v535_v5 = vsub.f32 %v503_v47, %v529_v3 }
 0x4c6   :  { %v700_v6 = vpop.eup %699  ;;  %v536_v7 = vsub.f32 %v878_v39, %v531_v4 }
 0x4c7   :  { %539 = vst.msk [vmem:[%s926_s8 + $0x8] sm:$0xff] %vm489_vm3, %v535_v5  ;;  %v533_v8 = vmul.f32 0.6931472, %v700_v6 }
 0x4c8   :  { %540 = vst.msk [vmem:[%s926_s8 + $0x10] sm:$0xff] %vm489_vm3, %v536_v7 }
 0x4c9   :  { %v537_v9 = vsub.f32 %v881_v45, %v533_v8 }
 0x4cb   :  { %541 = vst.msk [vmem:[%s926_s8 + $0x18] sm:$0xff] %vm489_vm3, %v537_v9 }
 0x4cc   :  { %737 = dma.done.wait [#allocation3], 768  }
 0x4cd   :  { %738 = vsyncadd [#allocation3], 4294966528 }
 0x4ce   :  { %565 = vsyncpa [#allocation3], 1 }
 0x4cf   :  { %566 = vsyncpa [#allocation4], 1 }

// kernel: tpu_custom_call.1
= control target key start
LH: loop header
LB: loop body
LE: loop exit
PB: predicated region body
PF: predicated region fallthrough
CT: control target
= control target key end

     0   :  { %16 = vsyncpa [#allocation4], 0  ;;  %s918_s0 = inlined_call_operand.vmem [shape: f32[3], index: 0, kind: input, shape index: {}]   ;;  %s919_s1 = inlined_call_operand.vmem [shape: bf16[32,16], index: 1, kind: input, shape index: {}]   ;;  %s920_s2 = inlined_call_operand.vmem [shape: bf16[16,32], index: 2, kind: input, shape index: {}]   ;;  %s921_s3 = inlined_call_operand.vmem [shape: f32[1,32], index: 3, kind: input, shape index: {}]   ;;  %s922_s4 = inlined_call_operand.vmem [shape: bf16[2,32,32], index: 4, kind: input, shape index: {}]   ;;  %s923_s5 = inlined_call_operand.vmem [shape: f32[2,1,32], index: 5, kind: input, shape index: {}]   ;;  %s924_s6 = inlined_call_operand.vmem [shape: bf16[32,8], index: 6, kind: input, shape index: {}]   ;;  %s925_s7 = inlined_call_operand.vmem [shape: f32[1,8], index: 7, kind: input, shape index: {}]   ;;  %s926_s8 = inlined_call_operand.vmem [shape: f32[32,8], index: 8, kind: output, shape index: {0}]   ;;  %s927_s9 = inlined_call_operand.vmem [shape: bf16[32,8], index: 9, kind: output, shape index: {1}]   ;;  %s928_s10 = inlined_call_operand.hbm [shape: bf16[3,32,32], index: 10, kind: output, shape index: {2}]  }
   0x1   :  { %17 = vsyncpa [#allocation3], 0  ;;  %s24_s15 = sshll.u32 %s918_s0, 4  ;;  %s25_s15 = int_to_ptr.vmem [resolvable:$true] %s24_s15 }
   0x2   :  { %s701_s16 = scalar_lea.vmem %s25_s15, 16  ;;  %p706_p1 = scmp.lt.s32.totalorder %s25_s15, %s25_s15 }
   0x3   :  { %p702_p0 = scmp.ne.s32.totalorder %s25_s15, %s701_s16  ;;  %p707_p2 = scmp.lt.s32.totalorder %s701_s16, %s701_s16 }
   0x5   :  { %p708_p3 = por %p707_p2, %p706_p1 }
   0x7   :  { %p709_p4 = pnand %p708_p3, %p702_p0 }
   0x9   :  { %712 = shalt.err (!%p709_p4)
}
   0xa   :  { %s739_s17 = smov [#allocation2]  }
   0xb   :  { %27 = dma.vmem_to_smem %s25_s15, 16, %s739_s17, [#allocation4]  }
   0xc   :  { %735 = dma.done.wait [#allocation4], 16  }
   0xd   :  { %736 = vsyncadd [#allocation4], 4294967280 }
   0xe   :  { %45 = sfence }
   0xf   :  { %v676_v0 = vld [vmem:[%s920_s2] sm:$0xff]   ;;  %vm76_vm0 = vcmask 130048   ;;  %v678_v2 = vld [vmem:[%s919_s1 + $0x8] sm:$0xff]   ;;  %vm148_vm1 = vcmask 257024   ;;  %vm182_vm2 = vcmask 261120   ;;  %v681_v20 = vld [vmem:[%s922_s4 + $0x10] sm:$0xff]  }
  0x10   :  { %v677_v1 = vld [vmem:[%s919_s1] sm:$0xff]   ;;  %642 = vmatprep.subr.bf16.mxu0 %v676_v0  ;;  %v680_v4 = vld [vmem:[%s922_s4 + $0x8] sm:$0xff]   ;;  %v682_v21 = vld [vmem:[%s922_s4 + $0x18] sm:$0xff]   ;;  %s153_s30 = sld [smem:[#allocation2]]  ;;  %s586_s11 = sld [smem:[#allocation2 + $0x1]]  ;;  %vm489_vm3 = vcmask 64512  }
  0x11   :  { %643 = vmatpush3.bf16.msra.mxu0 %v676_v0  ;;  %644 = vmatprep.mubr.msk.bf16.mxu0 %vm76_vm0, %v677_v1  ;;  %v679_v3 = vld [vmem:[%s922_s4] sm:$0xff]   ;;  %v684_v56 = vld [vmem:[%s924_s6 + $0x8] sm:$0xff]   ;;  %s601_s17 = sld [smem:[#allocation2 + $0x2]]  ;;  %vm484_vm4 = vcmask 60416  }
  0x12   :  { %648 = vmatprep.subr.bf16.mxu1 %v679_v3  ;;  %v567_v5 = vld [vmem:[%s921_s3] ss:$0 sm:$0xff]  ;;  %656 = vmatprep.subr.bf16.mxu0 %v681_v20  ;;  %v592_v57 = vld [vmem:[%s923_s5 + $0x1] ss:$0 sm:$0xff] }
  0x13   :  { %649 = vmatpush3.bf16.msra.mxu1 %v679_v3  ;;  %v577_v22 = vld [vmem:[%s923_s5] ss:$0 sm:$0xff] }
  0x14   :  { %645 = vmatmul.mubr.msk.bf16.vlgmr.msra.gmra.mrb[0].mxu0 %vm76_vm0, %v678_v2  ;;  %650 = vmatprep.subr.bf16.mxu1 %v680_v4  ;;  %v683_v55 = vld [vmem:[%s924_s6] sm:$0xff]  }
  0x15   :  { %657 = vmatpush3.bf16.msra.mxu0 %v681_v20 }
  0x16   :  { %658 = vmatprep.subr.bf16.mxu0 %v682_v21  ;;  %v154_v24 = vstv %s153_s30  ;;  %v264_v27 = vstv %s586_s11 }
  0x17   :  { %651 = vmatpush3.bf16.msra.mxu1 %v680_v4  ;;  %v379_v61 = vstv %s601_s17 }
  0x18   :  { %664 = vmatprep.subr.bf16.mxu1 %v683_v55 }
  0x19   :  { %659 = vmatpush3.bf16.msra.mxu0 %v682_v21  ;;  %v602_v21 = vld [vmem:[%s925_s7] ss:$0 sm:$0xff] }
  0xe7   :  { %v646_v6 = vpop.f32.mrb[0].mxu0 }
  0xe8   :  { %v126_v7 = vadd.f32 %v646_v6, %v567_v5  ;;  %v117_v8 = vpop.f32.mrb[1].mxu0 }
  0xe9   :  { %v118_v9 = vadd.f32 %v567_v5, %v117_v8  ;;  %v647_v10 = vpop.f32.mrb[2].mxu0 }
  0xea   :  { %v613_v11 = vpack.c.bf16 %v126_v7, %v126_v7  ;;  %v129_v12 = vadd.f32 %v647_v10, %v567_v5  ;;  %v120_v13 = vpop.f32.mrb[3].mxu0  ;;  %v157_v33 = vmul.f32 %v154_v24, %v126_v7 }
  0xeb   :  { %v611_v14 = vpack.c.bf16 %v118_v9, %v118_v9  ;;  %v121_v15 = vadd.f32 %v567_v5, %v120_v13  ;;  %v155_v34 = vmul.f32 %v154_v24, %v118_v9 }
  0xec   :  { %151 = vst.msk [vmem:[#allocation5 + $0x8] sm:$0xf] %vm148_vm1, %v613_v11  ;;  %v133_v16 = vpack.c.bf16 %v129_v12, %v126_v7  ;;  %v614_v17 = vpack.c.bf16 %v129_v12, %v129_v12  ;;  %v158_v37 = vmul.f32 %v154_v24, %v129_v12 }
  0xed   :  { %149 = vst.msk [vmem:[#allocation5] sm:$0xf] %vm148_vm1, %v611_v14  ;;  %v612_v18 = vpack.c.bf16 %v121_v15, %v121_v15  ;;  %v132_v19 = vpack.c.bf16 %v121_v15, %v118_v9  ;;  %v156_v41 = vmul.f32 %v154_v24, %v121_v15 }
  0xee   :  { %152 = vst.msk [vmem:[#allocation5 + $0xc] sm:$0xf] %vm148_vm1, %v614_v17 }
  0xef   :  { %150 = vst.msk [vmem:[#allocation5 + $0x4] sm:$0xf] %vm148_vm1, %v612_v18  ;;  %652 = vmatprep.mubr.msk.bf16.mxu1 %vm182_vm2, %v132_v19 }
  0xf0   :  { %653 = vmatmul.mubr.msk.bf16.vlgmr.msra.gmra.mrb[0].mxu1 %vm182_vm2, %v133_v16 }
  0xf1   :  { %665 = vmatpush3.bf16.msra.mxu1 %v683_v55 }
  0xf2   :  { %666 = vmatprep.subr.bf16.mxu1 %v684_v56 }
  0xf5   :  { %667 = vmatpush3.bf16.msra.mxu1 %v684_v56 }
 0x1c3   :  { %v654_v23 = vpop.f32.mrb[0].mxu1 }
 0x1c4   :  { %v232_v25 = vadd.f32 %v654_v23, %v577_v22  ;;  %v223_v26 = vpop.f32.mrb[1].mxu1 }
 0x1c5   :  { %v224_v28 = vadd.f32 %v577_v22, %v223_v26  ;;  %v655_v29 = vpop.f32.mrb[2].mxu1 }
 0x1c6   :  { %v240_v30 = vmax.f32 %v232_v25, 0.0  ;;  %v235_v31 = vadd.f32 %v655_v29, %v577_v22  ;;  %v226_v32 = vpop.f32.mrb[3].mxu1 }
 0x1c7   :  { %v238_v35 = vmax.f32 %v224_v28, 0.0  ;;  %v227_v36 = vadd.f32 %v577_v22, %v226_v32 }
 0x1c8   :  { %v617_v38 = vpack.c.bf16 %v240_v30, %v240_v30  ;;  %v267_v39 = vmul.f32 %v264_v27, %v240_v30  ;;  %v241_v40 = vmax.f32 %v235_v31, 0.0 }
 0x1c9   :  { %v615_v42 = vpack.c.bf16 %v238_v35, %v238_v35  ;;  %v265_v43 = vmul.f32 %v264_v27, %v238_v35  ;;  %v239_v44 = vmax.f32 %v227_v36, 0.0 }
 0x1ca   :  { %261 = vst.msk [vmem:[#allocation5 + $0x18] sm:$0xf] %vm148_vm1, %v617_v38  ;;  %v243_v45 = vpack.c.bf16 %v241_v40, %v240_v30  ;;  %v618_v46 = vpack.c.bf16 %v241_v40, %v241_v40  ;;  %v268_v47 = vmul.f32 %v264_v27, %v241_v40  ;;  %v271_v48 = vadd.f32 %v267_v39, %v157_v33 }
 0x1cb   :  { %259 = vst.msk [vmem:[#allocation5 + $0x10] sm:$0xf] %vm148_vm1, %v615_v42  ;;  %v242_v49 = vpack.c.bf16 %v239_v44, %v238_v35  ;;  %v616_v50 = vpack.c.bf16 %v239_v44, %v239_v44  ;;  %v266_v51 = vmul.f32 %v264_v27, %v239_v44  ;;  %v269_v52 = vadd.f32 %v265_v43, %v155_v34 }
 0x1cc   :  { %262 = vst.msk [vmem:[#allocation5 + $0x1c] sm:$0xf] %vm148_vm1, %v618_v46  ;;  %v272_v53 = vadd.f32 %v268_v47, %v158_v37 }
 0x1cd   :  { %260 = vst.msk [vmem:[#allocation5 + $0x14] sm:$0xf] %vm148_vm1, %v616_v50  ;;  %660 = vmatprep.mubr.msk.bf16.mxu0 %vm182_vm2, %v242_v49  ;;  %v270_v54 = vadd.f32 %v266_v51, %v156_v41 }
 0x1ce   :  { %661 = vmatmul.mubr.msk.bf16.vlgmr.msra.gmra.mrb[4].mxu0 %vm182_vm2, %v243_v45 }
 0x2a1   :  { %v662_v58 = vpop.f32.mrb[4].mxu0 }
 0x2a2   :  { %v347_v59 = vadd.f32 %v662_v58, %v592_v57  ;;  %v338_v60 = vpop.f32.mrb[5].mxu0 }
 0x2a3   :  { %v339_v62 = vadd.f32 %v592_v57, %v338_v60  ;;  %v663_v63 = vpop.f32.mrb[6].mxu0 }
 0x2a4   :  { %v355_v0 = vmax.f32 %v347_v59, 0.0  ;;  %v350_v1 = vadd.f32 %v663_v63, %v592_v57  ;;  %v341_v2 = vpop.f32.mrb[7].mxu0 }
 0x2a5   :  { %v353_v3 = vmax.f32 %v339_v62, 0.0  ;;  %v342_v4 = vadd.f32 %v592_v57, %v341_v2 }
 0x2a6   :  { %v621_v5 = vpack.c.bf16 %v355_v0, %v355_v0  ;;  %v382_v6 = vmul.f32 %v379_v61, %v355_v0  ;;  %v356_v7 = vmax.f32 %v350_v1, 0.0 }
 0x2a7   :  { %v619_v8 = vpack.c.bf16 %v353_v3, %v353_v3  ;;  %v380_v9 = vmul.f32 %v379_v61, %v353_v3  ;;  %v354_v10 = vmax.f32 %v342_v4, 0.0 }
 0x2a8   :  { %376 = vst.msk [vmem:[#allocation5 + $0x28] sm:$0xf] %vm148_vm1, %v621_v5  ;;  %v386_v11 = vadd.f32 %v382_v6, %v271_v48  ;;  %v622_v12 = vpack.c.bf16 %v356_v7, %v356_v7  ;;  %v383_v13 = vmul.f32 %v379_v61, %v356_v7 }
 0x2a9   :  { %374 = vst.msk [vmem:[#allocation5 + $0x20] sm:$0xf] %vm148_vm1, %v619_v8  ;;  %v384_v14 = vadd.f32 %v380_v9, %v269_v52  ;;  %v620_v15 = vpack.c.bf16 %v354_v10, %v354_v10  ;;  %v381_v16 = vmul.f32 %v379_v61, %v354_v10 }
 0x2aa   :  { %377 = vst.msk [vmem:[#allocation5 + $0x2c] sm:$0xf] %vm148_vm1, %v622_v12  ;;  %v387_v17 = vadd.f32 %v383_v13, %v272_v53 }
 0x2ab   :  { %375 = vst.msk [vmem:[#allocation5 + $0x24] sm:$0xf] %vm148_vm1, %v620_v15  ;;  %v385_v18 = vadd.f32 %v381_v16, %v270_v54 }
 0x2ac   :  { %v389_v19 = vpack.c.bf16 %v387_v17, %v386_v11 }
 0x2ad   :  { %v388_v20 = vpack.c.bf16 %v385_v18, %v384_v14 }
 0x2af   :  { %668 = vmatprep.mubr.msk.bf16.mxu1 %vm182_vm2, %v388_v20 }
 0x2b0   :  { %669 = vmatmul.mubr.msk.bf16.vlgmr.msra.gmra.mrb[4].mxu1 %vm182_vm2, %v389_v19 }
 0x383   :  { %v670_v22 = vpop.f32.mrb[4].mxu1 }
 0x384   :  { %v462_v23 = vadd.f32 %v670_v22, %v602_v21  ;;  %v453_v24 = vpop.f32.mrb[5].mxu1 }
 0x385   :  { %v454_v25 = vadd.f32 %v602_v21, %v453_v24  ;;  %v671_v26 = vpop.f32.mrb[6].mxu1 }
 0x386   :  { %v625_v27 = vpack.c.bf16 %v462_v23, %v462_v23  ;;  %v465_v28 = vadd.f32 %v671_v26, %v602_v21  ;;  %v456_v29 = vpop.f32.mrb[7].mxu1  ;;  %v496_v30 = vsel %vm489_vm3, %v462_v23, -inf }
 0x387   :  { %v623_v31 = vpack.c.bf16 %v454_v25, %v454_v25  ;;  %v457_v32 = vadd.f32 %v602_v21, %v456_v29  ;;  %497 = vmax.xlane.f32.xlu1 %v496_v30  ;;  %v490_v33 = vsel %vm489_vm3, %v454_v25, -inf }
 0x388   :  { %487 = vst.msk [vmem:[%s927_s9 + $0x8] sm:$0xf] %vm484_vm4, %v625_v27  ;;  %v626_v34 = vpack.c.bf16 %v465_v28, %v465_v28  ;;  %491 = vmax.xlane.f32.xlu0 %v490_v33  ;;  %v499_v36 = vsel %vm489_vm3, %v465_v28, -inf }
 0x389   :  { %485 = vst.msk [vmem:[%s927_s9] sm:$0xf] %vm484_vm4, %v623_v31  ;;  %v624_v35 = vpack.c.bf16 %v457_v32, %v457_v32  ;;  %v493_v37 = vsel %vm489_vm3, %v457_v32, -inf }
 0x38a   :  { %488 = vst.msk [vmem:[%s927_s9 + $0xc] sm:$0xf] %vm484_vm4, %v626_v34 }
 0x38b   :  { %486 = vst.msk [vmem:[%s927_s9 + $0x4] sm:$0xf] %vm484_vm4, %v624_v35  ;;  %500 = vmax.xlane.f32.xlu1 %v499_v36  ;;  %s740_s9 = smov [#allocation5]  }
 0x38c   :  { %494 = vmax.xlane.f32.xlu0 %v493_v37  ;;  %s551_s25 = sshll.u32 %s740_s9, 4  ;;  %s552_s25 = int_to_ptr.vmem [resolvable:$true] %s551_s25 }
 0x38d   :  { %s713_s26 = scalar_lea.vmem %s552_s25, 768  ;;  %p718_p6 = scmp.lt.s32.totalorder %s552_s25, %s552_s25 }
 0x38e   :  { %p714_p5 = scmp.ne.s32.totalorder %s552_s25, %s713_s26  ;;  %p719_p7 = scmp.lt.s32.totalorder %s713_s26, %s713_s26 }
 0x390   :  { %p720_p8 = por %p719_p7, %p718_p6 }
 0x392   :  { %p721_p9 = pnand %p720_p8, %p714_p5 }
 0x414   :  { %v498_v38 = vpop.xlane.xlu1 %497 }
 0x415   :  { %v878_v39 = vsub.f32 %v462_v23, %v498_v38  ;;  %v492_v40 = vpop.xlane.xlu0 %491 }
 0x416   :  { %v502_v41 = vsub.f32 %v454_v25, %v492_v40 }
 0x417   :  { %v510_v42 = vmul.f32 1.442695, %v878_v39 }
 0x418   :  { %v506_v43 = vmul.f32 1.442695, %v502_v41  ;;  %v501_v44 = vpop.xlane.xlu1 %500 }
 0x419   :  { %v881_v45 = vsub.f32 %v465_v28, %v501_v44  ;;  %v495_v46 = vpop.xlane.xlu0 %494 }
 0x41a   :  { %685 = vpow2.f32 %v506_v43  ;;  %v503_v47 = vsub.f32 %v457_v32, %v495_v46 }
 0x41b   :  { %687 = vpow2.f32 %v510_v42  ;;  %v512_v48 = vmul.f32 1.442695, %v881_v45 }
 0x41c   :  { %v508_v49 = vmul.f32 1.442695, %v503_v47 }
 0x41e   :  { %689 = vpow2.f32 %v508_v49 }
 0x41f   :  { %691 = vpow2.f32 %v512_v48 }
 0x424   :  { %v686_v50 = vpop.eup %685 }
 0x425   :  { %v514_v51 = vsel %vm489_vm3, %v686_v50, 0.0  ;;  %v688_v52 = vpop.eup %687 }
 0x426   :  { %515 = vadd.xlane.f32.xlu0 %v514_v51  ;;  %v520_v54 = vsel %vm489_vm3, %v688_v52, 0.0 }
 0x428   :  { %v690_v53 = vpop.eup %689 }
 0x429   :  { %v517_v55 = vsel %vm489_vm3, %v690_v53, 0.0  ;;  %v692_v56 = vpop.eup %691 }
 0x42a   :  { %521 = vadd.xlane.f32.xlu0 %v520_v54  ;;  %518 = vadd.xlane.f32.xlu1 %v517_v55  ;;  %v523_v57 = vsel %vm489_vm3, %v692_v56, 0.0 }
 0x42e   :  { %524 = vadd.xlane.f32.xlu1 %v523_v57 }
 0x42f   :  { %724 = shalt.err (!%p721_p9)
}
 0x430   :  { %s725_s3 = scalar_lea.hbm %s928_s10, 768 }
 0x431   :  { %p726_p10 = scmp.ne.s32.totalorder %s928_s10, %s725_s3  ;;  %p729_p11 = scmp.lt.u32.totalorder %s725_s3, %s928_s10 }
 0x433   :  { %p731_p12 = pnand %p729_p11, %p726_p10 }
 0x435   :  { %734 = shalt.err (!%p731_p12)
}
 0x436   :  { %s741_s12 = smov 64   ;;  %s742_s13 = smov 4  }
 0x437   :  { %557 = dma.vmem_to_hbm [thread:$0]  %s552_s25, 768, %s928_s10, [#allocation3], %s741_s12, %s741_s12, %s742_s13  }
 0x4b3   :  { %v516_v58 = vpop.xlane.xlu0 %515 }
 0x4b4   :  { %693 = vlog2.f32 %v516_v58 }
 0x4b7   :  { %v519_v59 = vpop.xlane.xlu1 %518  ;;  %v522_v60 = vpop.xlane.xlu0 %521 }
 0x4b8   :  { %695 = vlog2.f32 %v519_v59 }
 0x4b9   :  { %697 = vlog2.f32 %v522_v60 }
 0x4bb   :  { %v525_v61 = vpop.xlane.xlu1 %524 }
 0x4bc   :  { %699 = vlog2.f32 %v525_v61 }
 0x4be   :  { %v694_v62 = vpop.eup %693 }
 0x4bf   :  { %v527_v63 = vmul.f32 0.6931472, %v694_v62 }
 0x4c1   :  { %v534_v0 = vsub.f32 %v502_v41, %v527_v63 }
 0x4c2   :  { %v696_v1 = vpop.eup %695 }
 0x4c3   :  { %v698_v2 = vpop.eup %697  ;;  %538 = vst.msk [vmem:[%s926_s8] sm:$0xff] %vm489_vm3, %v534_v0  ;;  %v529_v3 = vmul.f32 0.6931472, %v696_v1 }
 0x4c4   :  { %v531_v4 = vmul.f32 0.6931472, %v698_v2 }
 0x4c5   :  { %v535_v5 = vsub.f32 %v503_v47, %v529_v3 }
 0x4c6   :  { %v700_v6 = vpop.eup %699  ;;  %v536_v7 = vsub.f32 %v878_v39, %v531_v4 }
 0x4c7   :  { %539 = vst.msk [vmem:[%s926_s8 + $0x8] sm:$0xff] %vm489_vm3, %v535_v5  ;;  %v533_v8 = vmul.f32 0.6931472, %v700_v6 }
 0x4c8   :  { %540 = vst.msk [vmem:[%s926_s8 + $0x10] sm:$0xff] %vm489_vm3, %v536_v7 }
 0x4c9   :  { %v537_v9 = vsub.f32 %v881_v45, %v533_v8 }
 0x4cb   :  { %541 = vst.msk [vmem:[%s926_s8 + $0x18] sm:$0xff] %vm489_vm3, %v537_v9 }
 0x4cc   :  { %737 = dma.done.wait [#allocation3], 768  }
 0x4cd   :  { %738 = vsyncadd [#allocation3], 4294966528 }
 0x4ce   :  { %565 = vsyncpa [#allocation3], 1 }
 0x4cf   :  { %566 = vsyncpa [#allocation4], 1 }

</bundles_post_ra>
